<compile_context>
chip_gen: v5e
topology: v5e:2x2
jax: 0.10.0
libtpu: 0.0.40
codegen_flags: <defaults>
</compile_context>

<pallas_src>
import numpy as np
import jax
import jax.numpy as jnp
from jax.experimental import pallas as pl
from jax.experimental.pallas import tpu as pltpu

# ---------------- model config (small, consistent with TransformerModelArgs) ----------------
B = 2            # batch
S = 8            # seq_len
DIM = 32         # model dim
N_HEADS = 4
N_KV_HEADS = 2
N_REP = N_HEADS // N_KV_HEADS
HD = DIM // N_HEADS          # head_dim = 8
HD2 = HD // 2                # 4
MULTIPLE_OF = 32
EPS = 1e-5
ROPE_THETA = 10000.0

BS = B * S                               # folded batch*seq rows = 16
QW = N_HEADS * HD                        # 32 (q width)
KW = N_KV_HEADS * HD                     # 16 (k width)
VW = N_KV_HEADS * HD                     # 16 (v width)
QKW = QW + KW                            # 48
BASEW = QW + KW + VW                     # 64
WALL = 128                               # merged projection width (padded to full lane vreg)

# FeedForward hidden dim, exactly as in the PyTorch __init__
_hidden = int(2 * (4 * DIM) / 3)
HID = MULTIPLE_OF * ((_hidden + MULTIPLE_OF - 1) // MULTIPLE_OF)   # 96
HID_PAD = 128                                                      # padded to lane-vreg width


# ----------------------------------- Pallas kernel -----------------------------------------
def transformer_block_kernel(x_ref, cossin_ref, bias_ref, wall_ref, wo_ref,
                             w13_ref, w2_ref, out_ref):
    x = x_ref[...]                                   # (BS, DIM) f32

    def rms(v):                                      # norm gains are folded into the weights
        return v * jax.lax.rsqrt(jnp.mean(v * v, axis=-1, keepdims=True) + EPS)

    # ---- attention norm + ONE fused projection [q|k|v|q_rh|k_rh|pad] (single MXU push) ----
    fused = jnp.dot(rms(x), wall_ref[...], preferred_element_type=jnp.float32)   # (BS, 128)

    # whole-tensor RoPE: q/k columns are per-head [even|odd]; partner cols are [-odd|even];
    # cos/sin tables are pre-tiled (and q-scaled by 1/sqrt(HD)) on the host.
    cossin = cossin_ref[...]                         # (BS, 2*QKW)
    qk_rot = (fused[:, :QKW] * cossin[:, :QKW]
              + fused[:, BASEW:BASEW + QKW] * cossin[:, QKW:])                    # (BS, 48)

    bias = bias_ref[...]                             # (BS, BS) causal + same-batch additive mask

    # ---- scores for all heads (kv-group outer loop), stacked along sublanes ----
    scores = []
    for g in range(N_KV_HEADS):
        k_g = qk_rot[:, QW + g * HD:QW + (g + 1) * HD]
        for r in range(N_REP):
            h = g * N_REP + r
            q_h = qk_rot[:, h * HD:(h + 1) * HD]
            scores.append(jnp.dot(q_h, k_g.T, preferred_element_type=jnp.float32) + bias)
    s_all = jnp.concatenate(scores, axis=0)          # (N_HEADS*BS, BS) = (64, 16)

    # ---- one batched softmax for all heads (4x fewer XLU/EUP pushes) ----
    m = jnp.max(s_all, axis=-1, keepdims=True)
    p_all = jnp.exp(s_all - m)
    p_all = p_all * pl.reciprocal(jnp.sum(p_all, axis=-1, keepdims=True), approx=True)

    # ---- per-head p@v accumulated straight through Wo (no VMEM slab, no concat) ----
    wo = wo_ref[...]                                 # (QW, DIM)
    acc = x                                          # residual folded into the accumulator
    for g in range(N_KV_HEADS):
        v_g = fused[:, QKW + g * HD:QKW + (g + 1) * HD]
        for r in range(N_REP):
            h = g * N_REP + r
            p_h = p_all[h * BS:(h + 1) * BS, :]
            o_h = jnp.dot(p_h, v_g, preferred_element_type=jnp.float32)           # (BS, HD)
            acc = acc + jnp.dot(o_h, wo[h * HD:(h + 1) * HD, :],
                                preferred_element_type=jnp.float32)
    h_res = acc                                      # x + attention output

    # ---- FFN (SwiGLU): ffn_norm folded into w13, hidden padded to 128 lanes ----
    gu = jnp.dot(rms(h_res), w13_ref[...], preferred_element_type=jnp.float32)    # (BS, 256)
    g_ = gu[:, :HID_PAD]
    u_ = gu[:, HID_PAD:]
    act = g_ * jax.nn.sigmoid(g_) * u_               # silu(g) * u  (padded lanes are exact 0)
    ffn = jnp.dot(act, w2_ref[...], preferred_element_type=jnp.float32)            # (BS, DIM)

    out_ref[...] = h_res + ffn


# ------------------------------- one-time host preprocessing --------------------------------
def prepare_block(params, freqs_cis):
    """All weight/table prep done ONCE in numpy; returns ready device arrays."""
    f32 = np.float32
    wq = np.asarray(params["wq"], f32)
    wk = np.asarray(params["wk"], f32)
    wv = np.asarray(params["wv"], f32)
    wo = np.asarray(params["wo"], f32)
    w1 = np.asarray(params["w1"], f32)
    w2 = np.asarray(params["w2"], f32)
    w3 = np.asarray(params["w3"], f32)
    an = np.asarray(params["attn_norm"], f32)[:, None]   # (DIM,1) fold as diag(w) @ W
    fn = np.asarray(params["ffn_norm"], f32)[:, None]

    # per-head column permutations: [even|odd] layout and rotate_half partner [-odd|even]
    even = np.arange(0, HD, 2)
    odd = np.arange(1, HD, 2)
    perm_head = np.concatenate([even, odd])               # [r | i]
    rh_perm_head = np.concatenate([odd, even])            # [i | r] (sign applied below)
    sign_head = np.concatenate([-np.ones(HD2, f32), np.ones(HD2, f32)])

    perm_q = np.concatenate([perm_head + h * HD for h in range(N_HEADS)])
    perm_k = np.concatenate([perm_head + h * HD for h in range(N_KV_HEADS)])
    rh_q = np.concatenate([rh_perm_head + h * HD for h in range(N_HEADS)])
    rh_k = np.concatenate([rh_perm_head + h * HD for h in range(N_KV_HEADS)])
    sign_q = np.tile(sign_head, N_HEADS)
    sign_k = np.tile(sign_head, N_KV_HEADS)

    # attn_norm folded into the projection rows; q/k columns RoPE-permuted
    wq_p = an * wq[:, perm_q]
    wk_p = an * wk[:, perm_k]
    wv_n = an * wv
    wq_rh = an * (wq[:, rh_q] * sign_q[None, :])
    wk_rh = an * (wk[:, rh_k] * sign_k[None, :])
    w_all = np.concatenate(
        [wq_p, wk_p, wv_n, wq_rh, wk_rh,
         np.zeros((DIM, WALL - BASEW - QKW), f32)], axis=1)          # (DIM, 128)

    # FFN: ffn_norm folded; hidden dim zero-padded 96 -> 128 (exact)
    w1p = np.zeros((DIM, HID_PAD), f32); w1p[:, :HID] = fn * w1
    w3p = np.zeros((DIM, HID_PAD), f32); w3p[:, :HID] = fn * w3
    w13 = np.concatenate([w1p, w3p], axis=1)                         # (DIM, 256)
    w2p = np.zeros((HID_PAD, DIM), f32); w2p[:HID, :] = w2           # (128, DIM)

    # cos/sin tables matching [q(4 heads)|k(2 heads)] columns; 1/sqrt(HD) folded into q cols
    fc = np.asarray(freqs_cis)
    cos = np.real(fc).astype(f32)                                    # (S, HD2)
    sin = np.imag(fc).astype(f32)
    scale = f32(1.0 / np.sqrt(HD))
    cos_h = np.concatenate([cos, cos], axis=1)                       # (S, HD) for [even|odd]
    sin_h = np.concatenate([sin, sin], axis=1)
    cos_qk = np.concatenate([np.tile(cos_h, (1, N_HEADS)) * scale,
                             np.tile(cos_h, (1, N_KV_HEADS))], axis=1)   # (S, 48)
    sin_qk = np.concatenate([np.tile(sin_h, (1, N_HEADS)) * scale,
                             np.tile(sin_h, (1, N_KV_HEADS))], axis=1)   # (S, 48)
    cossin = np.tile(np.concatenate([cos_qk, sin_qk], axis=1), (B, 1))   # (BS, 96)

    # additive attention bias: causal AND same-batch (batch folded into rows)
    r = np.arange(BS)
    same_batch = (r[:, None] // S) == (r[None, :] // S)
    causal = (r[:, None] % S) >= (r[None, :] % S)
    bias = np.where(same_batch & causal, 0.0, -1e30).astype(f32)     # (BS, BS)

    j = jnp.asarray
    return (j(cossin), j(bias), j(w_all), j(wo), j(w13), j(w2p))


# --------------------------------------- per-call path --------------------------------------
def _full(shape):
    return pl.BlockSpec(shape, lambda i, n=len(shape): (0,) * n)


_GRID_SPEC = pltpu.PrefetchScalarGridSpec(
    num_scalar_prefetch=0,
    grid=(1,),
    in_specs=[
        _full((BS, DIM)),        # x (batch folded into rows)
        _full((BS, 2 * QKW)),    # [cos|sin] table (q cols pre-scaled)
        _full((BS, BS)),         # additive causal+batch mask
        _full((DIM, WALL)),      # fused [Wq|Wk|Wv|Wq_rh|Wk_rh|pad], norms folded
        _full((QW, DIM)),        # wo
        _full((DIM, 2 * HID_PAD)),  # fused [w1|w3] (padded, ffn_norm folded)
        _full((HID_PAD, DIM)),   # w2 (padded rows)
    ],
    out_specs=pl.BlockSpec((BS, DIM), lambda i: (0, 0)),
)

_PALLAS_CALL = pl.pallas_call(
    transformer_block_kernel,
    out_shape=jax.ShapeDtypeStruct((BS, DIM), jnp.float32),
    grid_spec=_GRID_SPEC,
    compiler_params=pltpu.CompilerParams(dimension_semantics=("arbitrary",)),
)


@jax.jit
def transformer_block_apply(x, cossin, bias, w_all, wo, w13, w2p):
    out2d = _PALLAS_CALL(x.reshape(BS, DIM), cossin, bias, w_all, wo, w13, w2p)
    return out2d.reshape(B, S, DIM)


# ------------------------------- pure-JAX reference (torch semantics) ------------------------
def ref_transformer_block(x, freqs_cis, p):
    HI = jax.lax.Precision.HIGHEST

    def rmsnorm(v, w):
        return v * jax.lax.rsqrt(jnp.mean(v * v, -1, keepdims=True) + EPS) * w

    xn = rmsnorm(x, p["attn_norm"])
    xq = jnp.einsum("bsd,de->bse", xn, p["wq"], precision=HI).reshape(B, S, N_HEADS, HD)
    xk = jnp.einsum("bsd,de->bse", xn, p["wk"], precision=HI).reshape(B, S, N_KV_HEADS, HD)
    xv = jnp.einsum("bsd,de->bse", xn, p["wv"], precision=HI).reshape(B, S, N_KV_HEADS, HD)

    def rope(t):
        tc = t.reshape(*t.shape[:-1], HD2, 2)
        tc = tc[..., 0] + 1j * tc[..., 1]
        to = tc * freqs_cis.reshape(1, S, 1, HD2)
        return jnp.stack([jnp.real(to), jnp.imag(to)], axis=-1).reshape(t.shape)

    xq, xk = rope(xq), rope(xk)
    keys = jnp.repeat(xk, N_REP, axis=2)      # == torch.repeat_interleave on dim 2
    vals = jnp.repeat(xv, N_REP, axis=2)
    q, k, v = (t.transpose(0, 2, 1, 3) for t in (xq, keys, vals))
    scores = jnp.einsum("bhqd,bhkd->bhqk", q, k, precision=HI) / jnp.sqrt(HD)
    mask = jnp.tril(jnp.ones((S, S), dtype=bool))
    scores = jnp.where(mask, scores, -jnp.inf)
    attn = jax.nn.softmax(scores, axis=-1)
    o = jnp.einsum("bhqk,bhkd->bhqd", attn, v, precision=HI).transpose(0, 2, 1, 3).reshape(B, S, -1)
    h = x + jnp.einsum("bse,ed->bsd", o, p["wo"], precision=HI)

    hn = rmsnorm(h, p["ffn_norm"])
    g = jnp.einsum("bsd,dh->bsh", hn, p["w1"], precision=HI)
    u = jnp.einsum("bsd,dh->bsh", hn, p["w3"], precision=HI)
    ffn = jnp.einsum("bsh,hd->bsd", jax.nn.silu(g) * u, p["w2"], precision=HI)
    return h + ffn


# --------------------------------------------- main -----------------------------------------
if __name__ == "__main__":
    key = jax.random.PRNGKey(0)
    ks = jax.random.split(key, 9)

    def init(k, shape, scale=0.05):
        return scale * jax.random.normal(k, shape, dtype=jnp.float32)

    params = {
        "wq": init(ks[0], (DIM, N_HEADS * HD)),
        "wk": init(ks[1], (DIM, N_KV_HEADS * HD)),
        "wv": init(ks[2], (DIM, N_KV_HEADS * HD)),
        "wo": init(ks[3], (N_HEADS * HD, DIM)),
        "w1": init(ks[4], (DIM, HID)),
        "w2": init(ks[5], (HID, DIM)),
        "w3": init(ks[6], (DIM, HID)),
        "attn_norm": jnp.ones((DIM,), jnp.float32),
        "ffn_norm": jnp.ones((DIM,), jnp.float32),
    }

    x = jax.random.normal(ks[7], (B, S, DIM), dtype=jnp.float32)

    # precompute_freqs_cis (Llama-style), sliced to seq_len
    inv_freq = 1.0 / (ROPE_THETA ** (np.arange(0, HD, 2, dtype=np.float32) / HD))
    t = np.arange(S, dtype=np.float32)
    angles = np.outer(t, inv_freq)                       # (S, HD2)
    freqs_cis = jnp.asarray(np.cos(angles) + 1j * np.sin(angles), dtype=jnp.complex64)

    prepped = prepare_block(params, freqs_cis)           # one-time host-side prep
    out = transformer_block_apply(x, *prepped)
    out = jax.block_until_ready(out)

    ref = ref_transformer_block(x, freqs_cis, params)
    if not np.allclose(np.asarray(out), np.asarray(ref), atol=2e-3, rtol=2e-3):
        raise AssertionError("Pallas kernel output does not match reference")

    print("KERNEL_OK")
</pallas_src>

<mosaic_0001>
module attributes {stable_mosaic.version = 11 : i64} {
  func.func @transformer_block_kernel(%arg0: i32, %arg1: memref<16x32xf32, #tpu.memory_space<vmem>>, %arg2: memref<16x96xf32, #tpu.memory_space<vmem>>, %arg3: memref<16x16xf32, #tpu.memory_space<vmem>>, %arg4: memref<32x128xf32, #tpu.memory_space<vmem>>, %arg5: memref<32x32xf32, #tpu.memory_space<vmem>>, %arg6: memref<32x256xf32, #tpu.memory_space<vmem>>, %arg7: memref<128x32xf32, #tpu.memory_space<vmem>>, %arg8: memref<16x32xf32, #tpu.memory_space<vmem>>) attributes {dimension_semantics = [#tpu.dimension_semantics<arbitrary>], iteration_bounds = array<i64: 1>, scalar_prefetch = 0 : i64, scratch_operands = 0 : i64, tpu.core_type = #tpu.core_type<tc>, window_params = [{pipeline_mode = #tpu.pipeline_mode<synchronous>, transform_indices = @transform_0, window_bounds = array<i64: 16, 32>}, {pipeline_mode = #tpu.pipeline_mode<synchronous>, transform_indices = @transform_1, window_bounds = array<i64: 16, 96>}, {pipeline_mode = #tpu.pipeline_mode<synchronous>, transform_indices = @transform_2, window_bounds = array<i64: 16, 16>}, {pipeline_mode = #tpu.pipeline_mode<synchronous>, transform_indices = @transform_3, window_bounds = array<i64: 32, 128>}, {pipeline_mode = #tpu.pipeline_mode<synchronous>, transform_indices = @transform_4, window_bounds = array<i64: 32, 32>}, {pipeline_mode = #tpu.pipeline_mode<synchronous>, transform_indices = @transform_5, window_bounds = array<i64: 32, 256>}, {pipeline_mode = #tpu.pipeline_mode<synchronous>, transform_indices = @transform_6, window_bounds = array<i64: 128, 32>}, {pipeline_mode = #tpu.pipeline_mode<synchronous>, transform_indices = @transform_7, window_bounds = array<i64: 16, 32>}]} {
    %c0 = arith.constant 0 : index
    %c0_0 = arith.constant 0 : index
    %0 = vector.load %arg1[%c0, %c0_0] : memref<16x32xf32, #tpu.memory_space<vmem>>, vector<16x32xf32>
    %1 = arith.mulf %0, %0 : vector<16x32xf32>
    %cst = arith.constant dense<0.000000e+00> : vector<16xf32>
    %2 = vector.multi_reduction <add>, %1, %cst [1] : vector<16x32xf32> to vector<16xf32>
    %3 = vector.shape_cast %2 : vector<16xf32> to vector<16x1xf32>
    %cst_1 = arith.constant 3.200000e+01 : f32
    %4 = vector.broadcast %cst_1 : f32 to vector<16x1xf32>
    %5 = arith.divf %3, %4 : vector<16x1xf32>
    %cst_2 = arith.constant 9.99999974E-6 : f32
    %6 = vector.broadcast %cst_2 : f32 to vector<16x1xf32>
    %7 = arith.addf %5, %6 : vector<16x1xf32>
    %8 = math.rsqrt %7 : vector<16x1xf32>
    %9 = vector.broadcast %8 : vector<16x1xf32> to vector<16x32xf32>
    %10 = arith.mulf %0, %9 : vector<16x32xf32>
    %c0_3 = arith.constant 0 : index
    %c0_4 = arith.constant 0 : index
    %11 = vector.load %arg4[%c0_3, %c0_4] : memref<32x128xf32, #tpu.memory_space<vmem>>, vector<32x128xf32>
    %cst_5 = arith.constant dense<0.000000e+00> : vector<16x128xf32>
    %12 = tpu.matmul %10, %11, %cst_5 {dimension_numbers = #tpu.dot_dimension_numbers<[1], [0], [0], [1], [0, 0, 1, 1], [], []>} : vector<16x32xf32>, vector<32x128xf32>, vector<16x128xf32> -> vector<16x128xf32>
    %c0_6 = arith.constant 0 : index
    %c0_7 = arith.constant 0 : index
    %13 = vector.load %arg2[%c0_6, %c0_7] : memref<16x96xf32, #tpu.memory_space<vmem>>, vector<16x96xf32>
    %14 = vector.extract_strided_slice %12 {offsets = [0, 0], sizes = [16, 48], strides = [1, 1]} : vector<16x128xf32> to vector<16x48xf32>
    %15 = vector.extract_strided_slice %13 {offsets = [0, 0], sizes = [16, 48], strides = [1, 1]} : vector<16x96xf32> to vector<16x48xf32>
    %16 = arith.mulf %14, %15 : vector<16x48xf32>
    %17 = vector.extract_strided_slice %12 {offsets = [0, 64], sizes = [16, 48], strides = [1, 1]} : vector<16x128xf32> to vector<16x48xf32>
    %18 = vector.extract_strided_slice %13 {offsets = [0, 48], sizes = [16, 48], strides = [1, 1]} : vector<16x96xf32> to vector<16x48xf32>
    %19 = arith.mulf %17, %18 : vector<16x48xf32>
    %20 = arith.addf %16, %19 : vector<16x48xf32>
    %c0_8 = arith.constant 0 : index
    %c0_9 = arith.constant 0 : index
    %21 = vector.load %arg3[%c0_8, %c0_9] : memref<16x16xf32, #tpu.memory_space<vmem>>, vector<16x16xf32>
    %22 = vector.extract_strided_slice %20 {offsets = [0, 32], sizes = [16, 8], strides = [1, 1]} : vector<16x48xf32> to vector<16x8xf32>
    %23 = vector.extract_strided_slice %20 {offsets = [0, 0], sizes = [16, 8], strides = [1, 1]} : vector<16x48xf32> to vector<16x8xf32>
    %24 = tpu.transpose %22, [1, 0] : vector<16x8xf32> -> vector<8x16xf32>
    %cst_10 = arith.constant dense<0.000000e+00> : vector<16x16xf32>
    %25 = tpu.matmul %23, %24, %cst_10 {dimension_numbers = #tpu.dot_dimension_numbers<[1], [0], [0], [1], [0, 0, 1, 1], [], []>} : vector<16x8xf32>, vector<8x16xf32>, vector<16x16xf32> -> vector<16x16xf32>
    %26 = arith.addf %25, %21 : vector<16x16xf32>
    %27 = vector.extract_strided_slice %20 {offsets = [0, 8], sizes = [16, 8], strides = [1, 1]} : vector<16x48xf32> to vector<16x8xf32>
    %28 = tpu.transpose %22, [1, 0] : vector<16x8xf32> -> vector<8x16xf32>
    %cst_11 = arith.constant dense<0.000000e+00> : vector<16x16xf32>
    %29 = tpu.matmul %27, %28, %cst_11 {dimension_numbers = #tpu.dot_dimension_numbers<[1], [0], [0], [1], [0, 0, 1, 1], [], []>} : vector<16x8xf32>, vector<8x16xf32>, vector<16x16xf32> -> vector<16x16xf32>
    %30 = arith.addf %29, %21 : vector<16x16xf32>
    %31 = vector.extract_strided_slice %20 {offsets = [0, 40], sizes = [16, 8], strides = [1, 1]} : vector<16x48xf32> to vector<16x8xf32>
    %32 = vector.extract_strided_slice %20 {offsets = [0, 16], sizes = [16, 8], strides = [1, 1]} : vector<16x48xf32> to vector<16x8xf32>
    %33 = tpu.transpose %31, [1, 0] : vector<16x8xf32> -> vector<8x16xf32>
    %cst_12 = arith.constant dense<0.000000e+00> : vector<16x16xf32>
    %34 = tpu.matmul %32, %33, %cst_12 {dimension_numbers = #tpu.dot_dimension_numbers<[1], [0], [0], [1], [0, 0, 1, 1], [], []>} : vector<16x8xf32>, vector<8x16xf32>, vector<16x16xf32> -> vector<16x16xf32>
    %35 = arith.addf %34, %21 : vector<16x16xf32>
    %36 = vector.extract_strided_slice %20 {offsets = [0, 24], sizes = [16, 8], strides = [1, 1]} : vector<16x48xf32> to vector<16x8xf32>
    %37 = tpu.transpose %31, [1, 0] : vector<16x8xf32> -> vector<8x16xf32>
    %cst_13 = arith.constant dense<0.000000e+00> : vector<16x16xf32>
    %38 = tpu.matmul %36, %37, %cst_13 {dimension_numbers = #tpu.dot_dimension_numbers<[1], [0], [0], [1], [0, 0, 1, 1], [], []>} : vector<16x8xf32>, vector<8x16xf32>, vector<16x16xf32> -> vector<16x16xf32>
    %39 = arith.addf %38, %21 : vector<16x16xf32>
    %40 = tpu.concatenate %26, %30, %35, %39 in 0 : vector<16x16xf32>, vector<16x16xf32>, vector<16x16xf32>, vector<16x16xf32> -> vector<64x16xf32>
    %cst_14 = arith.constant dense<0xFF800000> : vector<64xf32>
    %41 = vector.multi_reduction <maximumf>, %40, %cst_14 [1] : vector<64x16xf32> to vector<64xf32>
    %42 = vector.shape_cast %41 : vector<64xf32> to vector<64x1xf32>
    %43 = vector.broadcast %42 : vector<64x1xf32> to vector<64x16xf32>
    %44 = arith.subf %40, %43 : vector<64x16xf32>
    %45 = math.exp %44 : vector<64x16xf32>
    %cst_15 = arith.constant dense<0.000000e+00> : vector<64xf32>
    %46 = vector.multi_reduction <add>, %45, %cst_15 [1] : vector<64x16xf32> to vector<64xf32>
    %47 = vector.shape_cast %46 : vector<64xf32> to vector<64x1xf32>
    %48 = tpu.reciprocal %47 {approx = true} : vector<64x1xf32> -> vector<64x1xf32>
    %49 = vector.broadcast %48 : vector<64x1xf32> to vector<64x16xf32>
    %50 = arith.mulf %45, %49 : vector<64x16xf32>
    %c0_16 = arith.constant 0 : index
    %c0_17 = arith.constant 0 : index
    %51 = vector.load %arg5[%c0_16, %c0_17] : memref<32x32xf32, #tpu.memory_space<vmem>>, vector<32x32xf32>
    %52 = vector.extract_strided_slice %12 {offsets = [0, 48], sizes = [16, 8], strides = [1, 1]} : vector<16x128xf32> to vector<16x8xf32>
    %53 = vector.extract_strided_slice %50 {offsets = [0, 0], sizes = [16, 16], strides = [1, 1]} : vector<64x16xf32> to vector<16x16xf32>
    %cst_18 = arith.constant dense<0.000000e+00> : vector<16x8xf32>
    %54 = tpu.matmul %53, %52, %cst_18 {dimension_numbers = #tpu.dot_dimension_numbers<[1], [0], [0], [1], [0, 0, 1, 1], [], []>} : vector<16x16xf32>, vector<16x8xf32>, vector<16x8xf32> -> vector<16x8xf32>
    %55 = vector.extract_strided_slice %51 {offsets = [0, 0], sizes = [8, 32], strides = [1, 1]} : vector<32x32xf32> to vector<8x32xf32>
    %cst_19 = arith.constant dense<0.000000e+00> : vector<16x32xf32>
    %56 = tpu.matmul %54, %55, %cst_19 {dimension_numbers = #tpu.dot_dimension_numbers<[1], [0], [0], [1], [0, 0, 1, 1], [], []>} : vector<16x8xf32>, vector<8x32xf32>, vector<16x32xf32> -> vector<16x32xf32>
    %57 = arith.addf %0, %56 : vector<16x32xf32>
    %58 = vector.extract_strided_slice %50 {offsets = [16, 0], sizes = [16, 16], strides = [1, 1]} : vector<64x16xf32> to vector<16x16xf32>
    %cst_20 = arith.constant dense<0.000000e+00> : vector<16x8xf32>
    %59 = tpu.matmul %58, %52, %cst_20 {dimension_numbers = #tpu.dot_dimension_numbers<[1], [0], [0], [1], [0, 0, 1, 1], [], []>} : vector<16x16xf32>, vector<16x8xf32>, vector<16x8xf32> -> vector<16x8xf32>
    %60 = vector.extract_strided_slice %51 {offsets = [8, 0], sizes = [8, 32], strides = [1, 1]} : vector<32x32xf32> to vector<8x32xf32>
    %cst_21 = arith.constant dense<0.000000e+00> : vector<16x32xf32>
    %61 = tpu.matmul %59, %60, %cst_21 {dimension_numbers = #tpu.dot_dimension_numbers<[1], [0], [0], [1], [0, 0, 1, 1], [], []>} : vector<16x8xf32>, vector<8x32xf32>, vector<16x32xf32> -> vector<16x32xf32>
    %62 = arith.addf %57, %61 : vector<16x32xf32>
    %63 = vector.extract_strided_slice %12 {offsets = [0, 56], sizes = [16, 8], strides = [1, 1]} : vector<16x128xf32> to vector<16x8xf32>
    %64 = vector.extract_strided_slice %50 {offsets = [32, 0], sizes = [16, 16], strides = [1, 1]} : vector<64x16xf32> to vector<16x16xf32>
    %cst_22 = arith.constant dense<0.000000e+00> : vector<16x8xf32>
    %65 = tpu.matmul %64, %63, %cst_22 {dimension_numbers = #tpu.dot_dimension_numbers<[1], [0], [0], [1], [0, 0, 1, 1], [], []>} : vector<16x16xf32>, vector<16x8xf32>, vector<16x8xf32> -> vector<16x8xf32>
    %66 = vector.extract_strided_slice %51 {offsets = [16, 0], sizes = [8, 32], strides = [1, 1]} : vector<32x32xf32> to vector<8x32xf32>
    %cst_23 = arith.constant dense<0.000000e+00> : vector<16x32xf32>
    %67 = tpu.matmul %65, %66, %cst_23 {dimension_numbers = #tpu.dot_dimension_numbers<[1], [0], [0], [1], [0, 0, 1, 1], [], []>} : vector<16x8xf32>, vector<8x32xf32>, vector<16x32xf32> -> vector<16x32xf32>
    %68 = arith.addf %62, %67 : vector<16x32xf32>
    %69 = vector.extract_strided_slice %50 {offsets = [48, 0], sizes = [16, 16], strides = [1, 1]} : vector<64x16xf32> to vector<16x16xf32>
    %cst_24 = arith.constant dense<0.000000e+00> : vector<16x8xf32>
    %70 = tpu.matmul %69, %63, %cst_24 {dimension_numbers = #tpu.dot_dimension_numbers<[1], [0], [0], [1], [0, 0, 1, 1], [], []>} : vector<16x16xf32>, vector<16x8xf32>, vector<16x8xf32> -> vector<16x8xf32>
    %71 = vector.extract_strided_slice %51 {offsets = [24, 0], sizes = [8, 32], strides = [1, 1]} : vector<32x32xf32> to vector<8x32xf32>
    %cst_25 = arith.constant dense<0.000000e+00> : vector<16x32xf32>
    %72 = tpu.matmul %70, %71, %cst_25 {dimension_numbers = #tpu.dot_dimension_numbers<[1], [0], [0], [1], [0, 0, 1, 1], [], []>} : vector<16x8xf32>, vector<8x32xf32>, vector<16x32xf32> -> vector<16x32xf32>
    %73 = arith.addf %68, %72 : vector<16x32xf32>
    %74 = arith.mulf %73, %73 : vector<16x32xf32>
    %cst_26 = arith.constant dense<0.000000e+00> : vector<16xf32>
    %75 = vector.multi_reduction <add>, %74, %cst_26 [1] : vector<16x32xf32> to vector<16xf32>
    %76 = vector.shape_cast %75 : vector<16xf32> to vector<16x1xf32>
    %cst_27 = arith.constant 3.200000e+01 : f32
    %77 = vector.broadcast %cst_27 : f32 to vector<16x1xf32>
    %78 = arith.divf %76, %77 : vector<16x1xf32>
    %cst_28 = arith.constant 9.99999974E-6 : f32
    %79 = vector.broadcast %cst_28 : f32 to vector<16x1xf32>
    %80 = arith.addf %78, %79 : vector<16x1xf32>
    %81 = math.rsqrt %80 : vector<16x1xf32>
    %82 = vector.broadcast %81 : vector<16x1xf32> to vector<16x32xf32>
    %83 = arith.mulf %73, %82 : vector<16x32xf32>
    %c0_29 = arith.constant 0 : index
    %c0_30 = arith.constant 0 : index
    %84 = vector.load %arg6[%c0_29, %c0_30] : memref<32x256xf32, #tpu.memory_space<vmem>>, vector<32x256xf32>
    %cst_31 = arith.constant dense<0.000000e+00> : vector<16x256xf32>
    %85 = tpu.matmul %83, %84, %cst_31 {dimension_numbers = #tpu.dot_dimension_numbers<[1], [0], [0], [1], [0, 0, 1, 1], [], []>} : vector<16x32xf32>, vector<32x256xf32>, vector<16x256xf32> -> vector<16x256xf32>
    %86 = vector.extract_strided_slice %85 {offsets = [0, 0], sizes = [16, 128], strides = [1, 1]} : vector<16x256xf32> to vector<16x128xf32>
    %87 = vector.extract_strided_slice %85 {offsets = [0, 128], sizes = [16, 128], strides = [1, 1]} : vector<16x256xf32> to vector<16x128xf32>
    %88 = arith.negf %86 : vector<16x128xf32>
    %89 = math.exp %88 : vector<16x128xf32>
    %cst_32 = arith.constant 1.000000e+00 : f32
    %90 = vector.broadcast %cst_32 : f32 to vector<16x128xf32>
    %91 = arith.addf %90, %89 : vector<16x128xf32>
    %92 = arith.divf %90, %91 : vector<16x128xf32>
    %93 = arith.mulf %86, %92 : vector<16x128xf32>
    %94 = arith.mulf %93, %87 : vector<16x128xf32>
    %c0_33 = arith.constant 0 : index
    %c0_34 = arith.constant 0 : index
    %95 = vector.load %arg7[%c0_33, %c0_34] : memref<128x32xf32, #tpu.memory_space<vmem>>, vector<128x32xf32>
    %cst_35 = arith.constant dense<0.000000e+00> : vector<16x32xf32>
    %96 = tpu.matmul %94, %95, %cst_35 {dimension_numbers = #tpu.dot_dimension_numbers<[1], [0], [0], [1], [0, 0, 1, 1], [], []>} : vector<16x128xf32>, vector<128x32xf32>, vector<16x32xf32> -> vector<16x32xf32>
    %97 = arith.addf %73, %96 : vector<16x32xf32>
    %c0_36 = arith.constant 0 : index
    %c0_37 = arith.constant 0 : index
    %98 = vector.load %arg8[%c0_36, %c0_37] : memref<16x32xf32, #tpu.memory_space<vmem>>, vector<16x32xf32>
    tpu.vector_store %arg8[%c0_36, %c0_37], %97 {strides = array<i32>} : memref<16x32xf32, #tpu.memory_space<vmem>>, vector<16x32xf32>,
    return
  }
  func.func @transform_0(%arg0: i32) -> (i32, i32) {
    %c0_i32 = arith.constant 0 : i32
    %c0_i32_0 = arith.constant 0 : i32
    %c0_i32_1 = arith.constant 0 : i32
    return %c0_i32, %c0_i32_0 : i32, i32
  }
  func.func @transform_1(%arg0: i32) -> (i32, i32) {
    %c0_i32 = arith.constant 0 : i32
    %c0_i32_0 = arith.constant 0 : i32
    %c0_i32_1 = arith.constant 0 : i32
    return %c0_i32, %c0_i32_0 : i32, i32
  }
  func.func @transform_2(%arg0: i32) -> (i32, i32) {
    %c0_i32 = arith.constant 0 : i32
    %c0_i32_0 = arith.constant 0 : i32
    %c0_i32_1 = arith.constant 0 : i32
    return %c0_i32, %c0_i32_0 : i32, i32
  }
  func.func @transform_3(%arg0: i32) -> (i32, i32) {
    %c0_i32 = arith.constant 0 : i32
    %c0_i32_0 = arith.constant 0 : i32
    %c0_i32_1 = arith.constant 0 : i32
    return %c0_i32, %c0_i32_0 : i32, i32
  }
  func.func @transform_4(%arg0: i32) -> (i32, i32) {
    %c0_i32 = arith.constant 0 : i32
    %c0_i32_0 = arith.constant 0 : i32
    %c0_i32_1 = arith.constant 0 : i32
    return %c0_i32, %c0_i32_0 : i32, i32
  }
  func.func @transform_5(%arg0: i32) -> (i32, i32) {
    %c0_i32 = arith.constant 0 : i32
    %c0_i32_0 = arith.constant 0 : i32
    %c0_i32_1 = arith.constant 0 : i32
    return %c0_i32, %c0_i32_0 : i32, i32
  }
  func.func @transform_6(%arg0: i32) -> (i32, i32) {
    %c0_i32 = arith.constant 0 : i32
    %c0_i32_0 = arith.constant 0 : i32
    %c0_i32_1 = arith.constant 0 : i32
    return %c0_i32, %c0_i32_0 : i32, i32
  }
  func.func @transform_7(%arg0: i32) -> (i32, i32) {
    %c0_i32 = arith.constant 0 : i32
    %c0_i32_0 = arith.constant 0 : i32
    %c0_i32_1 = arith.constant 0 : i32
    return %c0_i32, %c0_i32_0 : i32, i32
  }
}

</mosaic_0001>

<bundles_post_ra>
// kernel: transformer_block_apply.1
= control target key start
LH: loop header
LB: loop body
LE: loop exit
PB: predicated region body
PF: predicated region fallthrough
CT: control target
= control target key end

     0   :  { %12 = vsyncpa [#allocation3], 0  ;;  %s1282_s0 = inlined_call_operand.vmem [shape: f32[16,32], index: 0, kind: input, shape index: {}]   ;;  %s1283_s1 = inlined_call_operand.vmem [shape: f32[16,96], index: 1, kind: input, shape index: {}]   ;;  %s1284_s2 = inlined_call_operand.hbm [shape: f32[16,16], index: 2, kind: input, shape index: {}]   ;;  %s1285_s3 = inlined_call_operand.vmem [shape: f32[32,128], index: 3, kind: input, shape index: {}]   ;;  %s1286_s4 = inlined_call_operand.vmem [shape: f32[32,32], index: 4, kind: input, shape index: {}]   ;;  %s1287_s5 = inlined_call_operand.vmem [shape: f32[32,256], index: 5, kind: input, shape index: {}]   ;;  %s1288_s6 = inlined_call_operand.vmem [shape: f32[128,32], index: 6, kind: input, shape index: {}]   ;;  %s1289_s7 = inlined_call_operand.hbm [shape: f32[16,32], index: 7, kind: output, shape index: {}]  }
   0x1   :  { %13 = vsyncpa [#allocation4], 0  ;;  %s22_s26 = sshll.u32 %s1284_s2, 4  ;;  %s998_s27 = smov [#allocation2]   ;;  %s23_s26 = int_to_ptr.hbm [resolvable:$true] %s22_s26 }
   0x2   :  { %s24_s28 = sshll.u32 %s998_s27, 4  ;;  %s999_s29 = smov 128   ;;  %s25_s28 = int_to_ptr.vmem [resolvable:$true] %s24_s28 }
   0x3   :  { %s1000_s30 = smov 8  }
   0x4   :  { %30 = dma.hbm_to_vmem [thread:$0]  %s23_s26, 256, %s25_s28, [#allocation3], %s999_s29, %s999_s29, %s1000_s30  }
   0x5   :  { %994 = dma.done.wait [#allocation3], 256  }
   0x6   :  { %995 = vsyncadd [#allocation3], 4294967040  ;;  %v1061_v0 = vld [vmem:[%s1282_s0] sm:$0xff]  ;;  %vm47_vm0 = vcmask 261120   ;;  %v1068_v2 = vld [vmem:[%s1282_s0 + $0x8] sm:$0xff]  ;;  %v1001_v6 = vmov 32.0  }
   0x7   :  { %v45_v1 = vmul.f32 %v1061_v0, %v1061_v0  ;;  %v46_v4 = vmul.f32 %v1068_v2, %v1068_v2  ;;  %896 = vrcp.f32 %v1001_v6  ;;  %v90_v9 = vld [vmem:[%s1285_s3 + $0x18] sm:$0xff]  ;;  %v89_v11 = vld [vmem:[%s1285_s3 + $0x10] sm:$0xff]  ;;  %v88_v12 = vld [vmem:[%s1285_s3 + $0x8] sm:$0xff]  ;;  %s1002_s20 = smov 16   ;;  %s1005_s23 = smov 120   ;;  %vm152_vm8 = vcmask 64512  }
   0x8   :  { %109 = vmatpush.msra.mxu0 %v90_v9  ;;  %v87_v14 = vld [vmem:[%s1285_s3] sm:$0xff]  ;;  %v121_v16 = vld [vmem:[%s1283_s1 + $0x8] sm:$0xff]  ;;  %s1004_s3 = smov 96   ;;  %s1006_s24 = smov 112   ;;  %vm285_vm9 = vcmask 130048  }
   0x9   :  { %v48_v3 = vsel %vm47_vm0, %v45_v1, 0.0  ;;  %v51_v5 = vsel %vm47_vm0, %v46_v4, 0.0  ;;  %128 = vrot.lane.b32.xlu1 %v121_v16, %s1002_s20  ;;  %v120_v20 = vld [vmem:[%s1283_s1] sm:$0xff]  ;;  %s1003_s1 = smov 64   ;;  %s1007_s25 = smov 88   ;;  %v145_v6 = vld [vmem:[#allocation2 + $0x8] sm:$0xff] }
   0xa   :  { %49 = vadd.xlane.f32.xlu0 %v48_v3  ;;  %110 = vmatpush.msra.mxu0 %v89_v11  ;;  %s1008_s26 = smov 104   ;;  %v144_v63 = vld [vmem:[#allocation2] sm:$0xff]  ;;  %s1009_s27 = smov 80  }
   0xb   :  { %s1010_s28 = smov 72   ;;  %s817_s12 = sshll.u32 %s1289_s7, 4  ;;  %s818_s12 = int_to_ptr.hbm [resolvable:$true] %s817_s12 }
   0xc   :  { %111 = vmatpush.msra.mxu0 %v88_v12 }
   0xd   :  { %v897_v7 = vpop.eup %896 }
   0xe   :  { %v55_v8 = vmul.f32 32.0, %v897_v7  ;;  %112 = vmatpush.msra.mxu0 %v87_v14  ;;  %vm59_vm1 = vweird.f32 %v897_v7 }
  0x10   :  { %v56_v10 = vsub.f32 1.0, %v55_v8 }
  0x11   :  { %126 = vrot.lane.b32.xlu1 %v120_v20, %s1002_s20 }
  0x12   :  { %52 = vadd.xlane.f32.xlu0 %v51_v5  ;;  %v57_v13 = vmul.f32 %v897_v7, %v56_v10 }
  0x14   :  { %v58_v15 = vadd.f32 %v897_v7, %v57_v13 }
  0x16   :  { %v1089_v17 = vsel %vm59_vm1, %v897_v7, %v58_v15 }
  0x7b   :  { %v129_v42 = vpop.permute.xlu1 %128 }
  0x7d   :  { %v50_v18 = vpop.xlane.xlu0 %49 }
  0x7e   :  { %v61_v19 = vmul.f32 %v1089_v17, %v50_v18 }
  0x80   :  { %v63_v21 = vadd.f32 1e-05, %v61_v19 }
  0x82   :  { %898 = vrsqrt.f32 %v63_v21  ;;  %vm71_vm3 = vweird.f32 %v63_v21 }
  0x83   :  { %v127_v45 = vpop.permute.xlu1 %126 }
  0x85   :  { %v53_v22 = vpop.xlane.xlu0 %52 }
  0x86   :  { %v62_v23 = vmul.f32 %v1089_v17, %v53_v22 }
  0x88   :  { %v899_v24 = vpop.eup %898  ;;  %v64_v25 = vadd.f32 1e-05, %v62_v23 }
  0x89   :  { %v66_v26 = vmul.f32 %v899_v24, %v63_v21  ;;  %vm72_vm2 = vweird.f32 %v899_v24 }
  0x8a   :  { %900 = vrsqrt.f32 %v64_v25  ;;  %vm73_vm4 = vmor %vm71_vm3, %vm72_vm2  ;;  %vm81_vm6 = vweird.f32 %v64_v25 }
  0x8b   :  { %v67_v27 = vmul.f32 %v899_v24, %v66_v26 }
  0x8d   :  { %v68_v28 = vmul.f32 0.5, %v67_v27 }
  0x8f   :  { %v69_v29 = vsub.f32 1.5, %v68_v28 }
  0x90   :  { %v901_v30 = vpop.eup %900 }
  0x91   :  { %v76_v31 = vmul.f32 %v901_v30, %v64_v25  ;;  %v70_v32 = vmul.f32 %v899_v24, %v69_v29  ;;  %vm82_vm5 = vweird.f32 %v901_v30 }
  0x92   :  { %vm83_vm7 = vmor %vm81_vm6, %vm82_vm5 }
  0x93   :  { %v77_v33 = vmul.f32 %v901_v30, %v76_v31  ;;  %v74_v34 = vsel %vm73_vm4, %v899_v24, %v70_v32 }
  0x94   :  { %v85_v35 = vmul.f32 %v74_v34, %v1061_v0 }
  0x95   :  { %v78_v36 = vmul.f32 0.5, %v77_v33 }
  0x96   :  { %830 = vmatmul.msk.f32.vlgmr.msra.gmra.mxu0 %vm47_vm0, %v85_v35 }
  0x97   :  { %v79_v37 = vsub.f32 1.5, %v78_v36 }
  0x99   :  { %v80_v38 = vmul.f32 %v901_v30, %v79_v37 }
  0x9b   :  { %v84_v39 = vsel %vm83_vm7, %v901_v30, %v80_v38 }
  0x9c   :  { %v86_v40 = vmul.f32 %v84_v39, %v1068_v2 }
  0x9e   :  { %831 = vmatmul.msk.f32.gmra.mxu0 %vm47_vm0, %v86_v40 }
 0x113   :  { %v1100_v41 = vpop.f32.mrf.mxu0 }
 0x114   :  { %v132_v46 = vmul.f32 %v127_v45, %v1100_v41  ;;  %v122_v50 = vmul.f32 %v120_v20, %v1100_v41 }
 0x11b   :  { %v1102_v43 = vpop.f32.mrf.mxu0 }
 0x11c   :  { %v133_v44 = vmul.f32 %v129_v42, %v1102_v43  ;;  %v123_v47 = vmul.f32 %v121_v16, %v1102_v43  ;;  %v1136_v28 = vpack.i.bf16 %v1100_v41, %v1102_v43 }
 0x11e   :  { %138 = vrot.lane.b32.xlu2 %v133_v44, %s1003_s1 }
 0x126   :  { %136 = vrot.lane.b32.xlu2 %v132_v46, %s1003_s1 }
 0x178   :  { %v139_v48 = vpop.permute.xlu2 %138 }
 0x179   :  { %v143_v49 = vadd.f32 %v139_v48, %v123_v47 }
 0x17b   :  { %150 = vrot.lane.b32.xlu0 %v143_v49, %s1004_s3 }
 0x180   :  { %v137_v51 = vpop.permute.xlu2 %136 }
 0x181   :  { %v142_v52 = vadd.f32 %v137_v51, %v122_v50 }
 0x183   :  { %184 = vrot.lane.b32.xlu2 %v142_v52, %s1005_s23  ;;  %148 = vrot.lane.b32.xlu1 %v142_v52, %s1004_s3 }
 0x184   :  { %217 = vrot.lane.b32.xlu0 %v143_v49, %s1006_s24 }
 0x18b   :  { %186 = vrot.lane.b32.xlu2 %v143_v49, %s1005_s23  ;;  %221 = vrot.lane.b32.xlu1 %v143_v49, %s1007_s25 }
 0x193   :  { %215 = vrot.lane.b32.xlu2 %v142_v52, %s1006_s24  ;;  %219 = vrot.lane.b32.xlu1 %v142_v52, %s1007_s25 }
 0x19b   :  { %256 = vrot.lane.b32.xlu2 %v143_v49, %s1008_s26  ;;  %254 = vrot.lane.b32.xlu1 %v142_v52, %s1008_s26 }
 0x1dd   :  { %v185_v54 = vpop.permute.xlu2 %184 }
 0x1e5   :  { %v187_v57 = vpop.permute.xlu2 %186 }
 0x1ed   :  { %v151_v53 = vpop.permute.xlu0 %150  ;;  %v216_v59 = vpop.permute.xlu2 %215 }
 0x1ee   :  { %832 = vmatpush.xpose.msk.msra.mxu1 %vm152_vm8, %v151_v53  ;;  %836 = vmatpush.xpose.msk.msra.mxu2 %vm152_vm8, %v151_v53 }
 0x1f5   :  { %v149_v55 = vpop.permute.xlu1 %148  ;;  %v257_v62 = vpop.permute.xlu2 %256 }
 0x1f6   :  { %833 = vmatpush.xpose.msk.msra.mxu1 %vm152_vm8, %v149_v55  ;;  %837 = vmatpush.xpose.msk.msra.mxu2 %vm152_vm8, %v149_v55  ;;  %v218_v60 = vpop.permute.xlu0 %217 }
 0x1f9   :  { %834 = vmatmul.msk.f32.vlgmr.msra.gmra.mxu1 %vm152_vm8, %v142_v52  ;;  %838 = vmatmul.msk.f32.vlgmr.msra.gmra.mxu2 %vm152_vm8, %v185_v54 }
 0x1fd   :  { %v222_v56 = vpop.permute.xlu1 %221 }
 0x1fe   :  { %840 = vmatpush.xpose.msk.msrb.mxu0 %vm152_vm8, %v222_v56  ;;  %870 = vmatpush.xpose.msk.msra.mxu3 %vm152_vm8, %v222_v56 }
 0x201   :  { %835 = vmatmul.msk.f32.gmra.mxu1 %vm152_vm8, %v143_v49  ;;  %839 = vmatmul.msk.f32.gmra.mxu2 %vm152_vm8, %v187_v57 }
 0x205   :  { %v220_v58 = vpop.permute.xlu1 %219 }
 0x206   :  { %841 = vmatpush.xpose.msk.msrb.mxu0 %vm152_vm8, %v220_v58  ;;  %871 = vmatpush.xpose.msk.msra.mxu3 %vm152_vm8, %v220_v58 }
 0x209   :  { %842 = vmatmul.msk.f32.vlgmr.msrb.gmra.mxu0 %vm152_vm8, %v216_v59  ;;  %843 = vmatmul.msk.f32.vlgmr.msra.gmra.mxu3 %vm152_vm8, %v218_v60 }
 0x20a   :  { %844 = vmatpush.xpose.msk.msra.mxu0 %vm152_vm8, %v222_v56 }
 0x20d   :  { %v255_v61 = vpop.permute.xlu1 %254 }
 0x20e   :  { %845 = vmatpush.xpose.msk.msra.mxu0 %vm152_vm8, %v220_v58 }
 0x211   :  { %846 = vmatmul.msk.f32.vlgmr.msra.gmra.mxu0 %vm152_vm8, %v255_v61 }
 0x219   :  { %847 = vmatmul.msk.f32.gmra.mxu0 %vm152_vm8, %v257_v62 }
 0x276   :  { %v178_v1 = vpop.f32.mrf.mxu1 }
 0x277   :  { %v179_v3 = vadd.f32 %v178_v1, %v144_v63 }
 0x279   :  { %v286_v4 = vsel %vm285_vm9, %v179_v3, -inf }
 0x27a   :  { %287 = vmax.xlane.f32.xlu0 %v286_v4 }
 0x27c   :  { %v209_v5 = vpop.f32.mrf.mxu2 }
 0x27d   :  { %v210_v7 = vadd.f32 %v209_v5, %v144_v63 }
 0x27e   :  { %v181_v8 = vpop.f32.mrf.mxu1 }
 0x27f   :  { %v182_v9 = vadd.f32 %v181_v8, %v145_v6  ;;  %v292_v10 = vsel %vm285_vm9, %v210_v7, -inf }
 0x280   :  { %293 = vmax.xlane.f32.xlu1 %v292_v10 }
 0x281   :  { %v289_v11 = vsel %vm285_vm9, %v182_v9, -inf }
 0x282   :  { %290 = vmax.xlane.f32.xlu2 %v289_v11 }
 0x284   :  { %v212_v12 = vpop.f32.mrf.mxu2 }
 0x285   :  { %v213_v13 = vadd.f32 %v212_v12, %v145_v6 }
 0x286   :  { %v248_v14 = vpop.f32.mrf.mxu0 }
 0x287   :  { %v249_v15 = vadd.f32 %v248_v14, %v144_v63  ;;  %v295_v16 = vsel %vm285_vm9, %v213_v13, -inf }
 0x288   :  { %296 = vmax.xlane.f32.xlu0 %v295_v16 }
 0x289   :  { %v298_v18 = vsel %vm285_vm9, %v249_v15, -inf }
 0x28a   :  { %299 = vmax.xlane.f32.xlu2 %v298_v18 }
 0x28c   :  { %v251_v19 = vpop.f32.mrf.mxu3 }
 0x28d   :  { %v252_v20 = vadd.f32 %v251_v19, %v145_v6 }
 0x28e   :  { %v279_v21 = vpop.f32.mrf.mxu0 }
 0x28f   :  { %v280_v22 = vadd.f32 %v279_v21, %v144_v63  ;;  %v301_v23 = vsel %vm285_vm9, %v252_v20, -inf }
 0x290   :  { %302 = vmax.xlane.f32.xlu0 %v301_v23 }
 0x291   :  { %v304_v24 = vsel %vm285_vm9, %v280_v22, -inf }
 0x292   :  { %305 = vmax.xlane.f32.xlu1 %v304_v24 }
 0x296   :  { %v282_v25 = vpop.f32.mrf.mxu0 }
 0x297   :  { %v283_v26 = vadd.f32 %v282_v25, %v145_v6 }
 0x299   :  { %v307_v27 = vsel %vm285_vm9, %v283_v26, -inf }
 0x29a   :  { %308 = vmax.xlane.f32.xlu2 %v307_v27 }
 0x2b2   :  { %887 = vrot.lane.b32.xlu2 %v1136_v28, %s1009_s27 }
 0x2ed   :  { %v288_v29 = vpop.xlane.xlu0 %287 }
 0x2ee   :  { %v310_v30 = vsub.f32 %v179_v3, %v288_v29 }
 0x2f0   :  { %v318_v31 = vmul.f32 1.442695, %v310_v30 }
 0x2f2   :  { %902 = vpow2.f32 %v318_v31 }
 0x2f3   :  { %v294_v32 = vpop.xlane.xlu1 %293 }
 0x2f4   :  { %v312_v33 = vsub.f32 %v210_v7, %v294_v32 }
 0x2f5   :  { %v291_v34 = vpop.xlane.xlu2 %290 }
 0x2f6   :  { %v322_v35 = vmul.f32 1.442695, %v312_v33  ;;  %v311_v45 = vsub.f32 %v182_v9, %v291_v34 }
 0x2f8   :  { %v903_v36 = vpop.eup %902  ;;  %904 = vpow2.f32 %v322_v35  ;;  %v320_v47 = vmul.f32 1.442695, %v311_v45 }
 0x2f9   :  { %v334_v37 = vsel %vm285_vm9, %v903_v36, 0.0 }
 0x2fa   :  { %335 = vadd.xlane.f32.xlu1 %v334_v37 }
 0x2fb   :  { %v297_v38 = vpop.xlane.xlu0 %296 }
 0x2fc   :  { %v313_v39 = vsub.f32 %v213_v13, %v297_v38  ;;  %v374_v38 = vld [vmem:[%s1286_s4] sm:$0xff] }
 0x2fd   :  { %v300_v40 = vpop.xlane.xlu2 %299  ;;  %436 = vmatpush.msrb.mxu2 %v374_v38  ;;  %v781_v38 = vld [vmem:[%s1288_s6 + $0x68] sm:$0xff] }
 0x2fe   :  { %v905_v41 = vpop.eup %904  ;;  %v324_v42 = vmul.f32 1.442695, %v313_v39  ;;  %v314_v43 = vsub.f32 %v249_v15, %v300_v40  ;;  %v375_v39 = vld [vmem:[%s1286_s4 + $0x8] sm:$0xff]  ;;  %v376_v40 = vld [vmem:[%s1286_s4 + $0x10] sm:$0xff] }
 0x2ff   :  { %v340_v44 = vsel %vm285_vm9, %v905_v41, 0.0  ;;  %496 = vmatpush.msrb.mxu0 %v375_v39  ;;  %562 = vmatpush.msra.mxu2 %v376_v40  ;;  %v780_v39 = vld [vmem:[%s1288_s6 + $0x60] sm:$0xff]  ;;  %v779_v40 = vld [vmem:[%s1288_s6 + $0x58] sm:$0xff] }
 0x300   :  { %906 = vpow2.f32 %v324_v42  ;;  %v326_v46 = vmul.f32 1.442695, %v314_v43  ;;  %341 = vadd.xlane.f32.xlu0 %v340_v44  ;;  %v377_v43 = vld [vmem:[%s1286_s4 + $0x18] sm:$0xff] }
 0x301   :  { %622 = vmatpush.msra.mxu0 %v377_v43  ;;  %v776_v43 = vld [vmem:[%s1288_s6 + $0x40] sm:$0xff] }
 0x302   :  { %908 = vpow2.f32 %v326_v46 }
 0x303   :  { %v303_v50 = vpop.xlane.xlu0 %302  ;;  %910 = vpow2.f32 %v320_v47 }
 0x304   :  { %v315_v55 = vsub.f32 %v252_v20, %v303_v50 }
 0x305   :  { %v306_v48 = vpop.xlane.xlu1 %305 }
 0x306   :  { %v907_v49 = vpop.eup %906  ;;  %v316_v51 = vsub.f32 %v280_v22, %v306_v48  ;;  %v328_v57 = vmul.f32 1.442695, %v315_v55 }
 0x307   :  { %v343_v52 = vsel %vm285_vm9, %v907_v49, 0.0 }
 0x308   :  { %v1142_v53 = vpop.eup %908  ;;  %v330_v54 = vmul.f32 1.442695, %v316_v51  ;;  %344 = vadd.xlane.f32.xlu0 %v343_v52 }
 0x309   :  { %v346_v56 = vsel %vm285_vm9, %v1142_v53, 0.0  ;;  %v911_v59 = vpop.eup %910 }
 0x30a   :  { %912 = vpow2.f32 %v330_v54  ;;  %347 = vadd.xlane.f32.xlu1 %v346_v56  ;;  %v337_v63 = vsel %vm285_vm9, %v911_v59, 0.0 }
 0x30b   :  { %914 = vpow2.f32 %v328_v57 }
 0x30d   :  { %v309_v58 = vpop.xlane.xlu2 %308 }
 0x30e   :  { %v317_v60 = vsub.f32 %v283_v26, %v309_v58 }
 0x310   :  { %v913_v61 = vpop.eup %912  ;;  %v332_v62 = vmul.f32 1.442695, %v317_v60 }
 0x311   :  { %v352_v1 = vsel %vm285_vm9, %v913_v61, 0.0  ;;  %v915_v5 = vpop.eup %914 }
 0x312   :  { %916 = vpow2.f32 %v332_v62  ;;  %338 = vadd.xlane.f32.xlu1 %v337_v63  ;;  %353 = vadd.xlane.f32.xlu0 %v352_v1  ;;  %v349_v9 = vsel %vm285_vm9, %v915_v5, 0.0 }
 0x315   :  { %v888_v3 = vpop.permute.xlu2 %887 }
 0x316   :  { %v889_v4 = vunpack.i.l.bf16 %v888_v3  ;;  %v890_v7 = vunpack.i.h.bf16 %v888_v3 }
 0x318   :  { %v917_v6 = vpop.eup %916  ;;  %406 = vmatpush.msrb.mxu1 %v889_v4  ;;  %466 = vmatpush.msrb.mxu3 %v889_v4 }
 0x319   :  { %v355_v8 = vsel %vm285_vm9, %v917_v6, 0.0 }
 0x31a   :  { %356 = vadd.xlane.f32.xlu2 %v355_v8  ;;  %407 = vmatpush.msrb.mxu1 %v890_v7  ;;  %v670_v8 = vld [vmem:[%s1287_s5 + $0x20] sm:$0xff] }
 0x31b   :  { %467 = vmatpush.msrb.mxu3 %v890_v7  ;;  %350 = vadd.xlane.f32.xlu0 %v349_v9  ;;  %v673_v7 = vld [vmem:[%s1287_s5 + $0x38] sm:$0xff]  ;;  %v671_v9 = vld [vmem:[%s1287_s5 + $0x28] sm:$0xff] }
 0x32b   :  { %892 = vrot.lane.b32.xlu1 %v1136_v28, %s1010_s28 }
 0x36d   :  { %v336_v10 = vpop.xlane.xlu1 %335 }
 0x36e   :  { %918 = vrcp.f32 %v336_v10  ;;  %v668_v10 = vld [vmem:[%s1287_s5 + $0x10] sm:$0xff] }
 0x373   :  { %v342_v11 = vpop.xlane.xlu0 %341 }
 0x374   :  { %v919_v12 = vpop.eup %918  ;;  %920 = vrcp.f32 %v342_v11  ;;  %v669_v11 = vld [vmem:[%s1287_s5 + $0x18] sm:$0xff] }
 0x375   :  { %v366_v13 = vmul.f32 %v919_v12, %v903_v36  ;;  %v666_v12 = vld [vmem:[%s1287_s5] sm:$0xff] }
 0x377   :  { %848 = vmatmul.msk.f32.vlgmr.msrb.gmra.mxu1 %vm285_vm9, %v366_v13  ;;  %v667_v13 = vld [vmem:[%s1287_s5 + $0x8] sm:$0xff] }
 0x37a   :  { %v921_v14 = vpop.eup %920 }
 0x37b   :  { %v345_v15 = vpop.xlane.xlu0 %344  ;;  %v368_v16 = vmul.f32 %v921_v14, %v905_v41 }
 0x37c   :  { %922 = vrcp.f32 %v345_v15 }
 0x37d   :  { %v348_v18 = vpop.xlane.xlu1 %347  ;;  %852 = vmatmul.msk.f32.vlgmr.msrb.gmra.mxu3 %vm285_vm9, %v368_v16 }
 0x382   :  { %v923_v19 = vpop.eup %922 }
 0x383   :  { %v369_v20 = vmul.f32 %v923_v19, %v907_v49 }
 0x385   :  { %v339_v21 = vpop.xlane.xlu1 %338  ;;  %853 = vmatmul.msk.f32.gmra.mxu3 %vm285_vm9, %v369_v20  ;;  %v354_v24 = vpop.xlane.xlu0 %353 }
 0x386   :  { %924 = vrcp.f32 %v339_v21 }
 0x387   :  { %926 = vrcp.f32 %v348_v18 }
 0x388   :  { %928 = vrcp.f32 %v354_v24 }
 0x38c   :  { %v925_v22 = vpop.eup %924 }
 0x38d   :  { %v367_v23 = vmul.f32 %v925_v22, %v911_v59  ;;  %v357_v25 = vpop.xlane.xlu2 %356  ;;  %v927_v26 = vpop.eup %926 }
 0x38e   :  { %v351_v27 = vpop.xlane.xlu0 %350  ;;  %v929_v29 = vpop.eup %928  ;;  %930 = vrcp.f32 %v357_v25  ;;  %v370_v32 = vmul.f32 %v927_v26, %v1142_v53 }
 0x38f   :  { %849 = vmatmul.msk.f32.gmra.mxu1 %vm285_vm9, %v367_v23  ;;  %932 = vrcp.f32 %v351_v27  ;;  %v372_v33 = vmul.f32 %v929_v29, %v913_v61 }
 0x394   :  { %v931_v34 = vpop.eup %930 }
 0x395   :  { %v933_v35 = vpop.eup %932  ;;  %v373_v37 = vmul.f32 %v931_v34, %v917_v6 }
 0x396   :  { %v371_v36 = vmul.f32 %v933_v35, %v915_v5 }
 0x39d   :  { %v893_v28 = vpop.permute.xlu1 %892 }
 0x39e   :  { %v894_v30 = vunpack.i.l.bf16 %v893_v28  ;;  %v895_v31 = vunpack.i.h.bf16 %v893_v28 }
 0x3a0   :  { %532 = vmatpush.msra.mxu1 %v894_v30  ;;  %592 = vmatpush.msra.mxu3 %v894_v30 }
 0x3a2   :  { %533 = vmatpush.msra.mxu1 %v895_v31  ;;  %593 = vmatpush.msra.mxu3 %v895_v31 }
 0x3a3   :  { %856 = vmatmul.msk.f32.vlgmr.msra.gmra.mxu1 %vm285_vm9, %v370_v32  ;;  %860 = vmatmul.msk.f32.vlgmr.msra.gmra.mxu3 %vm285_vm9, %v372_v33 }
 0x3ab   :  { %857 = vmatmul.msk.f32.gmra.mxu1 %vm285_vm9, %v371_v36  ;;  %861 = vmatmul.msk.f32.gmra.mxu3 %vm285_vm9, %v373_v37  ;;  %v783_v36 = vld [vmem:[%s1288_s6 + $0x78] sm:$0xff]  ;;  %v782_v37 = vld [vmem:[%s1288_s6 + $0x70] sm:$0xff] }
 0x3ac   :  { %784 = vmatpush.msrb.mxu3 %v783_v36 }
 0x3ae   :  { %785 = vmatpush.msrb.mxu3 %v782_v37 }
 0x3b0   :  { %786 = vmatpush.msrb.mxu3 %v781_v38 }
 0x3b2   :  { %787 = vmatpush.msrb.mxu3 %v780_v39 }
 0x3b4   :  { %788 = vmatpush.msrb.mxu3 %v779_v40 }
 0x3f4   :  { %v409_v41 = vpop.f32.mrf.mxu1 }
 0x3f5   :  { %850 = vmatmul.msk.f32.vlgmr.msrb.gmra.mxu2 %vm152_vm8, %v409_v41  ;;  %v778_v41 = vld [vmem:[%s1288_s6 + $0x50] sm:$0xff] }
 0x3f6   :  { %715 = vmatpush.msrb.mxu2 %v673_v7  ;;  %789 = vmatpush.msrb.mxu3 %v778_v41 }
 0x3f8   :  { %716 = vmatpush.msrb.mxu2 %v671_v9 }
 0x3fa   :  { %717 = vmatpush.msrb.mxu2 %v669_v11 }
 0x3fc   :  { %718 = vmatpush.msrb.mxu2 %v667_v13 }
 0x400   :  { %v469_v42 = vpop.f32.mrf.mxu3 }
 0x401   :  { %854 = vmatmul.msk.f32.vlgmr.msrb.gmra.mxu0 %vm152_vm8, %v469_v42  ;;  %v777_v42 = vld [vmem:[%s1288_s6 + $0x48] sm:$0xff] }
 0x402   :  { %790 = vmatpush.msrb.mxu3 %v777_v42 }
 0x404   :  { %791 = vmatpush.msrb.mxu3 %v776_v43 }
 0x408   :  { %v472_v44 = vpop.f32.mrf.mxu3 }
 0x409   :  { %855 = vmatmul.msk.f32.gmra.mxu0 %vm152_vm8, %v472_v44  ;;  %v775_v44 = vld [vmem:[%s1288_s6 + $0x38] sm:$0xff] }
 0x40a   :  { %792 = vmatpush.msrb.mxu3 %v775_v44 }
 0x40c   :  { %v412_v45 = vpop.f32.mrf.mxu1 }
 0x40d   :  { %851 = vmatmul.msk.f32.gmra.mxu2 %vm152_vm8, %v412_v45  ;;  %v774_v45 = vld [vmem:[%s1288_s6 + $0x30] sm:$0xff] }
 0x40e   :  { %793 = vmatpush.msrb.mxu3 %v774_v45 }
 0x420   :  { %v535_v46 = vpop.f32.mrf.mxu1 }
 0x421   :  { %858 = vmatmul.msk.f32.vlgmr.msra.gmra.mxu2 %vm152_vm8, %v535_v46  ;;  %v773_v46 = vld [vmem:[%s1288_s6 + $0x28] sm:$0xff] }
 0x422   :  { %794 = vmatpush.msrb.mxu3 %v773_v46 }
 0x426   :  { %v595_v47 = vpop.f32.mrf.mxu3 }
 0x427   :  { %862 = vmatmul.msk.f32.vlgmr.msra.gmra.mxu0 %vm152_vm8, %v595_v47  ;;  %v772_v47 = vld [vmem:[%s1288_s6 + $0x20] sm:$0xff] }
 0x428   :  { %v538_v48 = vpop.f32.mrf.mxu1  ;;  %795 = vmatpush.msrb.mxu3 %v772_v47 }
 0x429   :  { %859 = vmatmul.msk.f32.gmra.mxu2 %vm152_vm8, %v538_v48  ;;  %v771_v48 = vld [vmem:[%s1288_s6 + $0x18] sm:$0xff] }
 0x42a   :  { %796 = vmatpush.msrb.mxu3 %v771_v48 }
 0x42e   :  { %v598_v49 = vpop.f32.mrf.mxu3 }
 0x42f   :  { %863 = vmatmul.msk.f32.gmra.mxu0 %vm152_vm8, %v598_v49  ;;  %v770_v49 = vld [vmem:[%s1288_s6 + $0x10] sm:$0xff] }
 0x430   :  { %797 = vmatpush.msrb.mxu3 %v770_v49 }
 0x478   :  { %v438_v51 = vpop.f32.mrf.mxu2 }
 0x479   :  { %v444_v54 = vadd.f32 %v438_v51, %v1061_v0 }
 0x47e   :  { %v498_v50 = vpop.f32.mrf.mxu0 }
 0x47f   :  { %v504_v55 = vadd.f32 %v498_v50, %v444_v54  ;;  %v769_v50 = vld [vmem:[%s1288_s6 + $0x8] sm:$0xff] }
 0x480   :  { %798 = vmatpush.msrb.mxu3 %v769_v50 }
 0x486   :  { %v501_v52 = vpop.f32.mrf.mxu0 }
 0x490   :  { %v441_v53 = vpop.f32.mrf.mxu2 }
 0x491   :  { %v445_v59 = vadd.f32 %v441_v53, %v1068_v2  ;;  %v672_v2 = vld [vmem:[%s1287_s5 + $0x30] sm:$0xff] }
 0x492   :  { %692 = vmatpush.msrb.mxu1 %v672_v2 }
 0x493   :  { %v505_v63 = vadd.f32 %v501_v52, %v445_v59  ;;  %v768_v52 = vld [vmem:[%s1288_s6] sm:$0xff]  ;;  %s1011_s6 = smov [#allocation5]  }
 0x494   :  { %693 = vmatpush.msrb.mxu1 %v670_v8  ;;  %799 = vmatpush.msrb.mxu3 %v768_v52  ;;  %s815_s2 = sshll.u32 %s1011_s6, 4  ;;  %s816_s2 = int_to_ptr.vmem [resolvable:$true] %s815_s2 }
 0x496   :  { %694 = vmatpush.msrb.mxu1 %v668_v10 }
 0x498   :  { %695 = vmatpush.msrb.mxu1 %v666_v12 }
 0x4a4   :  { %v564_v56 = vpop.f32.mrf.mxu2  ;;  %v624_v57 = vpop.f32.mrf.mxu0 }
 0x4a5   :  { %v570_v58 = vadd.f32 %v564_v56, %v504_v55 }
 0x4a7   :  { %v1182_v60 = vadd.f32 %v624_v57, %v570_v58 }
 0x4a9   :  { %v632_v61 = vmul.f32 %v1182_v60, %v1182_v60 }
 0x4ab   :  { %v634_v62 = vsel %vm47_vm0, %v632_v61, 0.0 }
 0x4ac   :  { %635 = vadd.xlane.f32.xlu0 %v634_v62  ;;  %v567_v1 = vpop.f32.mrf.mxu2  ;;  %v627_v4 = vpop.f32.mrf.mxu0 }
 0x4ad   :  { %v571_v3 = vadd.f32 %v567_v1, %v505_v63 }
 0x4af   :  { %v1187_v5 = vadd.f32 %v627_v4, %v571_v3 }
 0x4b1   :  { %v633_v0 = vmul.f32 %v1187_v5, %v1187_v5 }
 0x4b3   :  { %v637_v6 = vsel %vm47_vm0, %v633_v0, 0.0 }
 0x4b4   :  { %638 = vadd.xlane.f32.xlu0 %v637_v6 }
 0x51f   :  { %v636_v14 = vpop.xlane.xlu0 %635 }
 0x520   :  { %v640_v15 = vmul.f32 %v636_v14, %v1089_v17 }
 0x522   :  { %v642_v16 = vadd.f32 1e-05, %v640_v15 }
 0x524   :  { %934 = vrsqrt.f32 %v642_v16  ;;  %vm650_vm11 = vweird.f32 %v642_v16 }
 0x527   :  { %v639_v18 = vpop.xlane.xlu0 %638 }
 0x528   :  { %v641_v19 = vmul.f32 %v639_v18, %v1089_v17 }
 0x52a   :  { %v935_v20 = vpop.eup %934  ;;  %v643_v21 = vadd.f32 1e-05, %v641_v19 }
 0x52b   :  { %v645_v22 = vmul.f32 %v935_v20, %v642_v16  ;;  %vm651_vm10 = vweird.f32 %v935_v20 }
 0x52c   :  { %936 = vrsqrt.f32 %v643_v21  ;;  %vm652_vm12 = vmor %vm650_vm11, %vm651_vm10  ;;  %vm660_vm14 = vweird.f32 %v643_v21 }
 0x52d   :  { %v646_v23 = vmul.f32 %v935_v20, %v645_v22 }
 0x52f   :  { %v647_v24 = vmul.f32 0.5, %v646_v23 }
 0x531   :  { %v648_v25 = vsub.f32 1.5, %v647_v24 }
 0x532   :  { %v937_v26 = vpop.eup %936 }
 0x533   :  { %v649_v27 = vmul.f32 %v935_v20, %v648_v25  ;;  %v655_v28 = vmul.f32 %v937_v26, %v643_v21  ;;  %vm661_vm13 = vweird.f32 %v937_v26 }
 0x534   :  { %vm662_vm15 = vmor %vm660_vm14, %vm661_vm13 }
 0x535   :  { %v653_v29 = vsel %vm652_vm12, %v935_v20, %v649_v27  ;;  %v656_v30 = vmul.f32 %v937_v26, %v655_v28 }
 0x536   :  { %v664_v31 = vmul.f32 %v653_v29, %v1182_v60 }
 0x537   :  { %v657_v32 = vmul.f32 0.5, %v656_v30 }
 0x538   :  { %864 = vmatmul.msk.f32.vlgmr.msrb.gmra.mxu1 %vm47_vm0, %v664_v31  ;;  %866 = vmatmul.msk.f32.vlgmr.msrb.gmra.mxu2 %vm47_vm0, %v664_v31 }
 0x539   :  { %v658_v17 = vsub.f32 1.5, %v657_v32 }
 0x53b   :  { %v659_v33 = vmul.f32 %v937_v26, %v658_v17 }
 0x53d   :  { %v663_v34 = vsel %vm662_vm15, %v937_v26, %v659_v33 }
 0x53e   :  { %v665_v35 = vmul.f32 %v663_v34, %v1187_v5 }
 0x540   :  { %865 = vmatmul.msk.f32.gmra.mxu1 %vm47_vm0, %v665_v35  ;;  %867 = vmatmul.msk.f32.gmra.mxu2 %vm47_vm0, %v665_v35 }
 0x5b5   :  { %v697_v51 = vpop.f32.mrf.mxu1 }
 0x5b6   :  { %v868_v53 = vmul.f32 -1.442695, %v697_v51 }
 0x5b8   :  { %938 = vpow2.f32 %v868_v53 }
 0x5bb   :  { %v720_v10 = vpop.f32.mrf.mxu2 }
 0x5bd   :  { %v700_v54 = vpop.f32.mrf.mxu1 }
 0x5be   :  { %v939_v55 = vpop.eup %938  ;;  %v869_v56 = vmul.f32 -1.442695, %v700_v54 }
 0x5bf   :  { %v732_v57 = vadd.f32 1.0, %v939_v55 }
 0x5c0   :  { %940 = vpow2.f32 %v869_v56 }
 0x5c1   :  { %942 = vrcp.f32 %v732_v57  ;;  %v745_v1 = vand.u32 2147483648, %v732_v57  ;;  %v743_v4 = vand.u32 2147483647, %v732_v57  ;;  %vm739_vm2 = vweird.f32 %v732_v57 }
 0x5c3   :  { %v746_v2 = vor.u32 1.1754944e-38, %v745_v1  ;;  %vm744_vm4 = vcmp.eq.f32.partialorder %v743_v4, 8.507059e+37  ;;  %v723_v23 = vpop.f32.mrf.mxu2 }
 0x5c6   :  { %v941_v58 = vpop.eup %940 }
 0x5c7   :  { %v943_v59 = vpop.eup %942  ;;  %v733_v61 = vadd.f32 1.0, %v941_v58 }
 0x5c8   :  { %v735_v62 = vmul.f32 %v943_v59, %v732_v57  ;;  %vm740_vm1 = vweird.f32 %v943_v59 }
 0x5c9   :  { %944 = vrcp.f32 %v733_v61  ;;  %vm741_vm3 = vmor %vm739_vm2, %vm740_vm1  ;;  %v760_v13 = vand.u32 2147483648, %v733_v61  ;;  %v758_v16 = vand.u32 2147483647, %v733_v61  ;;  %vm754_vm6 = vweird.f32 %v733_v61 }
 0x5ca   :  { %v736_v63 = vsub.f32 1.0, %v735_v62 }
 0x5cb   :  { %v761_v19 = vor.u32 1.1754944e-38, %v760_v13  ;;  %vm759_vm8 = vcmp.eq.f32.partialorder %v758_v16, 8.507059e+37 }
 0x5cc   :  { %v737_v3 = vmul.f32 %v943_v59, %v736_v63 }
 0x5ce   :  { %v738_v0 = vadd.f32 %v943_v59, %v737_v3 }
 0x5cf   :  { %v945_v6 = vpop.eup %944 }
 0x5d0   :  { %v742_v7 = vsel %vm741_vm3, %v943_v59, %v738_v0  ;;  %v750_v8 = vmul.f32 %v945_v6, %v733_v61  ;;  %vm755_vm5 = vweird.f32 %v945_v6 }
 0x5d1   :  { %v747_v9 = vsel %vm744_vm4, %v746_v2, %v742_v7  ;;  %vm756_vm7 = vmor %vm754_vm6, %vm755_vm5 }
 0x5d2   :  { %v764_v11 = vmul.f32 %v747_v9, %v697_v51  ;;  %v751_v12 = vsub.f32 1.0, %v750_v8 }
 0x5d4   :  { %v766_v14 = vmul.f32 %v764_v11, %v720_v10  ;;  %v752_v15 = vmul.f32 %v945_v6, %v751_v12 }
 0x5d6   :  { %v753_v18 = vadd.f32 %v945_v6, %v752_v15  ;;  %800 = vmatmul.f32.vlgmr.msrb.gmra.mxu3 %v766_v14 }
 0x5d8   :  { %v757_v20 = vsel %vm756_vm7, %v945_v6, %v753_v18 }
 0x5d9   :  { %v762_v21 = vsel %vm759_vm8, %v761_v19, %v757_v20 }
 0x5da   :  { %v765_v22 = vmul.f32 %v762_v21, %v700_v54 }
 0x5dc   :  { %v767_v24 = vmul.f32 %v765_v22, %v723_v23 }
 0x5de   :  { %803 = vmatmul.f32.gmra.mxu3 %v767_v24 }
 0x659   :  { %v801_v25 = vpop.f32.mrf.mxu3 }
 0x65a   :  { %v807_v26 = vadd.f32 %v801_v25, %v1182_v60 }
 0x65c   :  { %809 = vst.msk [vmem:[#allocation5] sm:$0xff] %vm47_vm0, %v807_v26 }
 0x661   :  { %v804_v27 = vpop.f32.mrf.mxu3 }
 0x662   :  { %v808_v28 = vadd.f32 %v804_v27, %v1187_v5 }
 0x664   :  { %810 = vst.msk [vmem:[#allocation5 + $0x8] sm:$0xff] %vm47_vm0, %v808_v28 }
 0x665   :  { %823 = dma.vmem_to_hbm [thread:$0]  %s816_s2, 256, %s818_s12, [#allocation4], %s999_s29, %s999_s29, %s1000_s30  }
 0x666   :  { %996 = dma.done.wait [#allocation4], 256  }
 0x667   :  { %997 = vsyncadd [#allocation4], 4294967040 }
 0x668   :  { %828 = vsyncpa [#allocation3], 1 }
 0x669   :  { %829 = vsyncpa [#allocation4], 1 }

</bundles_post_ra>
